<compile_context>
chip_gen: v6e
topology: v6e:2x2x1
jax: 0.10.0
libtpu: 0.0.40
codegen_flags: <defaults>
</compile_context>

<pallas_src>
import jax
import jax.numpy as jnp
from jax.experimental import pallas as pl
from jax.experimental.pallas import tpu as pltpu

_LAYER_DIMS = [(8, 6), (6, 4), (4, 2), (2, 1)]
_N_FEATURES = 8


def _param_offsets():
    offs, o = {}, 0
    for i, (fi, fo) in enumerate(_LAYER_DIMS, start=1):
        offs[f"w{i}"] = o
        o += fi * fo
        offs[f"b{i}"] = o
        o += fo
    return offs, o


_OFFS, _N_PARAMS = _param_offsets()


def _cdiv(a, b):
    return -(-a // b)


def _fold_params(params):
    """Fold sigmoid(z) = 0.5 + 0.5*tanh(z/2) into the affine layers.

    Produces a packed f32 vector [w1,b1,w2,b2,w3,b3,w4,b4] such that
        t1 = tanh(x  @ w1' + b1')
        ti = tanh(t_{i-1} @ wi' + bi')          (i >= 2)
        y  = 0.5 + 0.5 * t4
    is exactly the original 4x (Linear -> Sigmoid) stack (weights stored (in,out)).
    """
    pieces = []
    for i, (fi, fo) in enumerate(_LAYER_DIMS, start=1):
        w = params[f"w{i}"].astype(jnp.float32)
        b = params[f"b{i}"].astype(jnp.float32)
        if i == 1:
            w_f = 0.5 * w
            b_f = 0.5 * b
        else:
            # previous activation h = 0.5 + 0.5*t  =>  (h @ w + b)/2
            #   = t @ (w/4) + (b/2 + 0.25 * colsum(w))
            w_f = 0.25 * w
            b_f = 0.5 * b + 0.25 * jnp.sum(w, axis=0)
        pieces.append(w_f.reshape(-1))
        pieces.append(b_f.reshape(-1))
    return jnp.concatenate(pieces)


def _mlp_kernel(p_ref, x_ref, o_ref):
    # p_ref: SMEM f32[95] packed, tanh-folded parameters.
    # x_ref: VMEM (8, SUB, 128) -- feature k is the lane-dense slab x_ref[k].
    # o_ref: VMEM (SUB, 128).
    sub = x_ref.shape[1]                      # static (multiple of 8)
    ch = 16 if sub % 16 == 0 else 8           # 1-2 vregs per feature slab
    n_chunks = sub // ch

    # Hoist the 95 scalar SMEM reads out of the per-chunk loop.
    layers = []
    for i, (fi, fo) in enumerate(_LAYER_DIMS, start=1):
        wo, bo = _OFFS[f"w{i}"], _OFFS[f"b{i}"]
        w = [[p_ref[wo + k * fo + j] for j in range(fo)] for k in range(fi)]
        b = [p_ref[bo + j] for j in range(fo)]
        layers.append(((fi, fo), w, b))

    @pl.loop(0, n_chunks)
    def _(c):
        off = pl.multiple_of(c * ch, ch)
        rows = pl.ds(off, ch)
        # Register-resident chunk: 8 input vregs (ch=8) / 16 vregs (ch=16).
        h = [x_ref[k, rows, :] for k in range(_N_FEATURES)]
        for (fi, fo), w, b in layers:
            nxt = []
            for j in range(fo):
                acc = h[0] * w[0][j] + b[j]
                for k in range(1, fi):
                    acc = acc + h[k] * w[k][j]
                nxt.append(jnp.tanh(acc))     # EUP slot, off the VALU
            h = nxt
        # Final sigmoid = 0.5 + 0.5 * t4; lane-dense unmasked store.
        o_ref[rows, :] = 0.5 * h[0] + 0.5


def mlp_forward(x, params):
    """x: (..., 8) float -> (..., 1), matching the PyTorch Model forward."""
    lead = x.shape[:-1]
    f_in = x.shape[-1]
    assert f_in == _N_FEATURES, f_in
    m = 1
    for d in lead:
        m *= int(d)

    # Pad rows only to the 1024-row quantum (sublane 8 x lane 128), then pick a
    # tile size up to 32768 rows with >= 2 grid steps whenever m allows (keeps
    # both v7x TensorCores busy; harmless on v5e/v6e).
    m_q = _cdiv(m, 1024)                      # number of 1024-row quanta
    n_blocks = max(_cdiv(m_q, 32), 2) if m_q >= 2 else 1
    tile_q = _cdiv(m_q, n_blocks)
    tile_m = tile_q * 1024
    m_pad = n_blocks * tile_m
    sub = tile_m // 128

    # Layout plumbing: one fused pad+transpose+reshape pass puts rows on the
    # lane axis: (m, 8) -> (8, m_pad//128, 128).  Eliminating this extra HBM
    # pass entirely would require a feature-major producer upstream.
    x2d = x.reshape(m, f_in).astype(jnp.float32)
    xt = jnp.pad(x2d, ((0, m_pad - m), (0, 0))).T.reshape(
        f_in, m_pad // 128, 128)

    packed = _fold_params(params)

    out = pl.pallas_call(
        _mlp_kernel,
        out_shape=jax.ShapeDtypeStruct((m_pad // 128, 128), jnp.float32),
        grid=(n_blocks,),
        in_specs=[pl.BlockSpec(memory_space=pltpu.MemorySpace.SMEM),
                  pl.BlockSpec((f_in, sub, 128), lambda i: (0, i, 0))],
        out_specs=pl.BlockSpec((sub, 128), lambda i: (i, 0)),
        compiler_params=pltpu.CompilerParams(
            dimension_semantics=("parallel",)),
    )(packed, xt)

    # Padded rows hold garbage (tanh of biases) -- slice them off.
    return out.reshape(m_pad)[:m].reshape(lead + (1,))


def init_params(key):
    """Deterministic init matching nn.Linear shapes (stored as (in, out))."""
    params = {}
    for i, (fan_in, fan_out) in enumerate(_LAYER_DIMS, start=1):
        key, kw, kb = jax.random.split(key, 3)
        bound = 1.0 / float(fan_in) ** 0.5
        params[f"w{i}"] = jax.random.uniform(
            kw, (fan_in, fan_out), jnp.float32, -bound, bound)
        params[f"b{i}"] = jax.random.uniform(
            kb, (fan_out,), jnp.float32, -bound, bound)
    return params


def _reference(x, params):
    h = x.astype(jnp.float32)
    for i in range(1, 5):
        h = jax.nn.sigmoid(h @ params[f"w{i}"] + params[f"b{i}"])
    return h


if __name__ == "__main__":
    key = jax.random.PRNGKey(0)
    key, kx1, kx2 = jax.random.split(key, 3)
    params = init_params(key)

    # "multiple dimension input": (batch=2, seq=4, features=8)
    x = jax.random.normal(kx1, (2, 4, 8), jnp.float32)
    out = jax.block_until_ready(mlp_forward(x, params))
    ref = _reference(x, params)
    assert out.shape == (2, 4, 1), out.shape
    assert jnp.allclose(out, ref, atol=1e-5, rtol=1e-5), "mismatch vs reference"

    # Second shape exercising the padded / multi-block (grid >= 2) path.
    x2 = jax.random.normal(kx2, (4, 300, 8), jnp.float32)
    out2 = jax.block_until_ready(mlp_forward(x2, params))
    ref2 = _reference(x2, params)
    assert out2.shape == (4, 300, 1), out2.shape
    assert jnp.allclose(out2, ref2, atol=1e-5, rtol=1e-5), "mismatch vs reference"

    print("KERNEL_OK")
</pallas_src>

<mosaic_0001>
module attributes {stable_mosaic.version = 11 : i64} {
  func.func @_mlp_kernel(%arg0: i32, %arg1: memref<95xf32, #tpu.memory_space<smem>>, %arg2: memref<8x8x128xf32, #tpu.memory_space<vmem>>, %arg3: memref<8x128xf32, #tpu.memory_space<vmem>>) attributes {dimension_semantics = [#tpu.dimension_semantics<parallel>], iteration_bounds = array<i64: 1>, scalar_prefetch = 0 : i64, scratch_operands = 0 : i64, tpu.core_type = #tpu.core_type<tc>, window_params = [{transform_indices = @transform_0, window_bounds = array<i64: 95>}, {transform_indices = @transform_1, window_bounds = array<i64: 8, 8, 128>}, {transform_indices = @transform_2, window_bounds = array<i64: 8, 128>}]} {
    %c0 = arith.constant 0 : index
    %0 = memref.load %arg1[%c0] : memref<95xf32, #tpu.memory_space<smem>>
    %c1 = arith.constant 1 : index
    %1 = memref.load %arg1[%c1] : memref<95xf32, #tpu.memory_space<smem>>
    %c2 = arith.constant 2 : index
    %2 = memref.load %arg1[%c2] : memref<95xf32, #tpu.memory_space<smem>>
    %c3 = arith.constant 3 : index
    %3 = memref.load %arg1[%c3] : memref<95xf32, #tpu.memory_space<smem>>
    %c4 = arith.constant 4 : index
    %4 = memref.load %arg1[%c4] : memref<95xf32, #tpu.memory_space<smem>>
    %c5 = arith.constant 5 : index
    %5 = memref.load %arg1[%c5] : memref<95xf32, #tpu.memory_space<smem>>
    %c6 = arith.constant 6 : index
    %6 = memref.load %arg1[%c6] : memref<95xf32, #tpu.memory_space<smem>>
    %c7 = arith.constant 7 : index
    %7 = memref.load %arg1[%c7] : memref<95xf32, #tpu.memory_space<smem>>
    %c8 = arith.constant 8 : index
    %8 = memref.load %arg1[%c8] : memref<95xf32, #tpu.memory_space<smem>>
    %c9 = arith.constant 9 : index
    %9 = memref.load %arg1[%c9] : memref<95xf32, #tpu.memory_space<smem>>
    %c10 = arith.constant 10 : index
    %10 = memref.load %arg1[%c10] : memref<95xf32, #tpu.memory_space<smem>>
    %c11 = arith.constant 11 : index
    %11 = memref.load %arg1[%c11] : memref<95xf32, #tpu.memory_space<smem>>
    %c12 = arith.constant 12 : index
    %12 = memref.load %arg1[%c12] : memref<95xf32, #tpu.memory_space<smem>>
    %c13 = arith.constant 13 : index
    %13 = memref.load %arg1[%c13] : memref<95xf32, #tpu.memory_space<smem>>
    %c14 = arith.constant 14 : index
    %14 = memref.load %arg1[%c14] : memref<95xf32, #tpu.memory_space<smem>>
    %c15 = arith.constant 15 : index
    %15 = memref.load %arg1[%c15] : memref<95xf32, #tpu.memory_space<smem>>
    %c16 = arith.constant 16 : index
    %16 = memref.load %arg1[%c16] : memref<95xf32, #tpu.memory_space<smem>>
    %c17 = arith.constant 17 : index
    %17 = memref.load %arg1[%c17] : memref<95xf32, #tpu.memory_space<smem>>
    %c18 = arith.constant 18 : index
    %18 = memref.load %arg1[%c18] : memref<95xf32, #tpu.memory_space<smem>>
    %c19 = arith.constant 19 : index
    %19 = memref.load %arg1[%c19] : memref<95xf32, #tpu.memory_space<smem>>
    %c20 = arith.constant 20 : index
    %20 = memref.load %arg1[%c20] : memref<95xf32, #tpu.memory_space<smem>>
    %c21 = arith.constant 21 : index
    %21 = memref.load %arg1[%c21] : memref<95xf32, #tpu.memory_space<smem>>
    %c22 = arith.constant 22 : index
    %22 = memref.load %arg1[%c22] : memref<95xf32, #tpu.memory_space<smem>>
    %c23 = arith.constant 23 : index
    %23 = memref.load %arg1[%c23] : memref<95xf32, #tpu.memory_space<smem>>
    %c24 = arith.constant 24 : index
    %24 = memref.load %arg1[%c24] : memref<95xf32, #tpu.memory_space<smem>>
    %c25 = arith.constant 25 : index
    %25 = memref.load %arg1[%c25] : memref<95xf32, #tpu.memory_space<smem>>
    %c26 = arith.constant 26 : index
    %26 = memref.load %arg1[%c26] : memref<95xf32, #tpu.memory_space<smem>>
    %c27 = arith.constant 27 : index
    %27 = memref.load %arg1[%c27] : memref<95xf32, #tpu.memory_space<smem>>
    %c28 = arith.constant 28 : index
    %28 = memref.load %arg1[%c28] : memref<95xf32, #tpu.memory_space<smem>>
    %c29 = arith.constant 29 : index
    %29 = memref.load %arg1[%c29] : memref<95xf32, #tpu.memory_space<smem>>
    %c30 = arith.constant 30 : index
    %30 = memref.load %arg1[%c30] : memref<95xf32, #tpu.memory_space<smem>>
    %c31 = arith.constant 31 : index
    %31 = memref.load %arg1[%c31] : memref<95xf32, #tpu.memory_space<smem>>
    %c32 = arith.constant 32 : index
    %32 = memref.load %arg1[%c32] : memref<95xf32, #tpu.memory_space<smem>>
    %c33 = arith.constant 33 : index
    %33 = memref.load %arg1[%c33] : memref<95xf32, #tpu.memory_space<smem>>
    %c34 = arith.constant 34 : index
    %34 = memref.load %arg1[%c34] : memref<95xf32, #tpu.memory_space<smem>>
    %c35 = arith.constant 35 : index
    %35 = memref.load %arg1[%c35] : memref<95xf32, #tpu.memory_space<smem>>
    %c36 = arith.constant 36 : index
    %36 = memref.load %arg1[%c36] : memref<95xf32, #tpu.memory_space<smem>>
    %c37 = arith.constant 37 : index
    %37 = memref.load %arg1[%c37] : memref<95xf32, #tpu.memory_space<smem>>
    %c38 = arith.constant 38 : index
    %38 = memref.load %arg1[%c38] : memref<95xf32, #tpu.memory_space<smem>>
    %c39 = arith.constant 39 : index
    %39 = memref.load %arg1[%c39] : memref<95xf32, #tpu.memory_space<smem>>
    %c40 = arith.constant 40 : index
    %40 = memref.load %arg1[%c40] : memref<95xf32, #tpu.memory_space<smem>>
    %c41 = arith.constant 41 : index
    %41 = memref.load %arg1[%c41] : memref<95xf32, #tpu.memory_space<smem>>
    %c42 = arith.constant 42 : index
    %42 = memref.load %arg1[%c42] : memref<95xf32, #tpu.memory_space<smem>>
    %c43 = arith.constant 43 : index
    %43 = memref.load %arg1[%c43] : memref<95xf32, #tpu.memory_space<smem>>
    %c44 = arith.constant 44 : index
    %44 = memref.load %arg1[%c44] : memref<95xf32, #tpu.memory_space<smem>>
    %c45 = arith.constant 45 : index
    %45 = memref.load %arg1[%c45] : memref<95xf32, #tpu.memory_space<smem>>
    %c46 = arith.constant 46 : index
    %46 = memref.load %arg1[%c46] : memref<95xf32, #tpu.memory_space<smem>>
    %c47 = arith.constant 47 : index
    %47 = memref.load %arg1[%c47] : memref<95xf32, #tpu.memory_space<smem>>
    %c48 = arith.constant 48 : index
    %48 = memref.load %arg1[%c48] : memref<95xf32, #tpu.memory_space<smem>>
    %c49 = arith.constant 49 : index
    %49 = memref.load %arg1[%c49] : memref<95xf32, #tpu.memory_space<smem>>
    %c50 = arith.constant 50 : index
    %50 = memref.load %arg1[%c50] : memref<95xf32, #tpu.memory_space<smem>>
    %c51 = arith.constant 51 : index
    %51 = memref.load %arg1[%c51] : memref<95xf32, #tpu.memory_space<smem>>
    %c52 = arith.constant 52 : index
    %52 = memref.load %arg1[%c52] : memref<95xf32, #tpu.memory_space<smem>>
    %c53 = arith.constant 53 : index
    %53 = memref.load %arg1[%c53] : memref<95xf32, #tpu.memory_space<smem>>
    %c54 = arith.constant 54 : index
    %54 = memref.load %arg1[%c54] : memref<95xf32, #tpu.memory_space<smem>>
    %c55 = arith.constant 55 : index
    %55 = memref.load %arg1[%c55] : memref<95xf32, #tpu.memory_space<smem>>
    %c56 = arith.constant 56 : index
    %56 = memref.load %arg1[%c56] : memref<95xf32, #tpu.memory_space<smem>>
    %c57 = arith.constant 57 : index
    %57 = memref.load %arg1[%c57] : memref<95xf32, #tpu.memory_space<smem>>
    %c58 = arith.constant 58 : index
    %58 = memref.load %arg1[%c58] : memref<95xf32, #tpu.memory_space<smem>>
    %c59 = arith.constant 59 : index
    %59 = memref.load %arg1[%c59] : memref<95xf32, #tpu.memory_space<smem>>
    %c60 = arith.constant 60 : index
    %60 = memref.load %arg1[%c60] : memref<95xf32, #tpu.memory_space<smem>>
    %c61 = arith.constant 61 : index
    %61 = memref.load %arg1[%c61] : memref<95xf32, #tpu.memory_space<smem>>
    %c62 = arith.constant 62 : index
    %62 = memref.load %arg1[%c62] : memref<95xf32, #tpu.memory_space<smem>>
    %c63 = arith.constant 63 : index
    %63 = memref.load %arg1[%c63] : memref<95xf32, #tpu.memory_space<smem>>
    %c64 = arith.constant 64 : index
    %64 = memref.load %arg1[%c64] : memref<95xf32, #tpu.memory_space<smem>>
    %c65 = arith.constant 65 : index
    %65 = memref.load %arg1[%c65] : memref<95xf32, #tpu.memory_space<smem>>
    %c66 = arith.constant 66 : index
    %66 = memref.load %arg1[%c66] : memref<95xf32, #tpu.memory_space<smem>>
    %c67 = arith.constant 67 : index
    %67 = memref.load %arg1[%c67] : memref<95xf32, #tpu.memory_space<smem>>
    %c68 = arith.constant 68 : index
    %68 = memref.load %arg1[%c68] : memref<95xf32, #tpu.memory_space<smem>>
    %c69 = arith.constant 69 : index
    %69 = memref.load %arg1[%c69] : memref<95xf32, #tpu.memory_space<smem>>
    %c70 = arith.constant 70 : index
    %70 = memref.load %arg1[%c70] : memref<95xf32, #tpu.memory_space<smem>>
    %c71 = arith.constant 71 : index
    %71 = memref.load %arg1[%c71] : memref<95xf32, #tpu.memory_space<smem>>
    %c72 = arith.constant 72 : index
    %72 = memref.load %arg1[%c72] : memref<95xf32, #tpu.memory_space<smem>>
    %c73 = arith.constant 73 : index
    %73 = memref.load %arg1[%c73] : memref<95xf32, #tpu.memory_space<smem>>
    %c74 = arith.constant 74 : index
    %74 = memref.load %arg1[%c74] : memref<95xf32, #tpu.memory_space<smem>>
    %c75 = arith.constant 75 : index
    %75 = memref.load %arg1[%c75] : memref<95xf32, #tpu.memory_space<smem>>
    %c76 = arith.constant 76 : index
    %76 = memref.load %arg1[%c76] : memref<95xf32, #tpu.memory_space<smem>>
    %c77 = arith.constant 77 : index
    %77 = memref.load %arg1[%c77] : memref<95xf32, #tpu.memory_space<smem>>
    %c78 = arith.constant 78 : index
    %78 = memref.load %arg1[%c78] : memref<95xf32, #tpu.memory_space<smem>>
    %c79 = arith.constant 79 : index
    %79 = memref.load %arg1[%c79] : memref<95xf32, #tpu.memory_space<smem>>
    %c80 = arith.constant 80 : index
    %80 = memref.load %arg1[%c80] : memref<95xf32, #tpu.memory_space<smem>>
    %c81 = arith.constant 81 : index
    %81 = memref.load %arg1[%c81] : memref<95xf32, #tpu.memory_space<smem>>
    %c82 = arith.constant 82 : index
    %82 = memref.load %arg1[%c82] : memref<95xf32, #tpu.memory_space<smem>>
    %c83 = arith.constant 83 : index
    %83 = memref.load %arg1[%c83] : memref<95xf32, #tpu.memory_space<smem>>
    %c84 = arith.constant 84 : index
    %84 = memref.load %arg1[%c84] : memref<95xf32, #tpu.memory_space<smem>>
    %c85 = arith.constant 85 : index
    %85 = memref.load %arg1[%c85] : memref<95xf32, #tpu.memory_space<smem>>
    %c86 = arith.constant 86 : index
    %86 = memref.load %arg1[%c86] : memref<95xf32, #tpu.memory_space<smem>>
    %c87 = arith.constant 87 : index
    %87 = memref.load %arg1[%c87] : memref<95xf32, #tpu.memory_space<smem>>
    %c88 = arith.constant 88 : index
    %88 = memref.load %arg1[%c88] : memref<95xf32, #tpu.memory_space<smem>>
    %c89 = arith.constant 89 : index
    %89 = memref.load %arg1[%c89] : memref<95xf32, #tpu.memory_space<smem>>
    %c90 = arith.constant 90 : index
    %90 = memref.load %arg1[%c90] : memref<95xf32, #tpu.memory_space<smem>>
    %c91 = arith.constant 91 : index
    %91 = memref.load %arg1[%c91] : memref<95xf32, #tpu.memory_space<smem>>
    %c92 = arith.constant 92 : index
    %92 = memref.load %arg1[%c92] : memref<95xf32, #tpu.memory_space<smem>>
    %c93 = arith.constant 93 : index
    %93 = memref.load %arg1[%c93] : memref<95xf32, #tpu.memory_space<smem>>
    %c94 = arith.constant 94 : index
    %94 = memref.load %arg1[%c94] : memref<95xf32, #tpu.memory_space<smem>>
    %c0_i32 = arith.constant 0 : i32
    %c1_i32 = arith.constant 1 : i32
    %95 = arith.muli %c0_i32, %c1_i32 : i32
    %c0_i32_0 = arith.constant 0 : i32
    %96 = arith.addi %c0_i32_0, %95 : i32
    %c8_i32 = arith.constant 8 : i32
    %97 = arith.muli %96, %c8_i32 : i32
    %98 = tpu.assume_multiple %97, 8 : i32
    %c0_1 = arith.constant 0 : index
    %99 = arith.index_cast %98 : i32 to index
    %c0_2 = arith.constant 0 : index
    %100 = vector.load %arg2[%c0_1, %99, %c0_2] : memref<8x8x128xf32, #tpu.memory_space<vmem>>, vector<1x8x128xf32>
    %101 = vector.shape_cast %100 : vector<1x8x128xf32> to vector<8x128xf32>
    %c1_3 = arith.constant 1 : index
    %102 = arith.index_cast %98 : i32 to index
    %c0_4 = arith.constant 0 : index
    %103 = vector.load %arg2[%c1_3, %102, %c0_4] : memref<8x8x128xf32, #tpu.memory_space<vmem>>, vector<1x8x128xf32>
    %104 = vector.shape_cast %103 : vector<1x8x128xf32> to vector<8x128xf32>
    %c2_5 = arith.constant 2 : index
    %105 = arith.index_cast %98 : i32 to index
    %c0_6 = arith.constant 0 : index
    %106 = vector.load %arg2[%c2_5, %105, %c0_6] : memref<8x8x128xf32, #tpu.memory_space<vmem>>, vector<1x8x128xf32>
    %107 = vector.shape_cast %106 : vector<1x8x128xf32> to vector<8x128xf32>
    %c3_7 = arith.constant 3 : index
    %108 = arith.index_cast %98 : i32 to index
    %c0_8 = arith.constant 0 : index
    %109 = vector.load %arg2[%c3_7, %108, %c0_8] : memref<8x8x128xf32, #tpu.memory_space<vmem>>, vector<1x8x128xf32>
    %110 = vector.shape_cast %109 : vector<1x8x128xf32> to vector<8x128xf32>
    %c4_9 = arith.constant 4 : index
    %111 = arith.index_cast %98 : i32 to index
    %c0_10 = arith.constant 0 : index
    %112 = vector.load %arg2[%c4_9, %111, %c0_10] : memref<8x8x128xf32, #tpu.memory_space<vmem>>, vector<1x8x128xf32>
    %113 = vector.shape_cast %112 : vector<1x8x128xf32> to vector<8x128xf32>
    %c5_11 = arith.constant 5 : index
    %114 = arith.index_cast %98 : i32 to index
    %c0_12 = arith.constant 0 : index
    %115 = vector.load %arg2[%c5_11, %114, %c0_12] : memref<8x8x128xf32, #tpu.memory_space<vmem>>, vector<1x8x128xf32>
    %116 = vector.shape_cast %115 : vector<1x8x128xf32> to vector<8x128xf32>
    %c6_13 = arith.constant 6 : index
    %117 = arith.index_cast %98 : i32 to index
    %c0_14 = arith.constant 0 : index
    %118 = vector.load %arg2[%c6_13, %117, %c0_14] : memref<8x8x128xf32, #tpu.memory_space<vmem>>, vector<1x8x128xf32>
    %119 = vector.shape_cast %118 : vector<1x8x128xf32> to vector<8x128xf32>
    %c7_15 = arith.constant 7 : index
    %120 = arith.index_cast %98 : i32 to index
    %c0_16 = arith.constant 0 : index
    %121 = vector.load %arg2[%c7_15, %120, %c0_16] : memref<8x8x128xf32, #tpu.memory_space<vmem>>, vector<1x8x128xf32>
    %122 = vector.shape_cast %121 : vector<1x8x128xf32> to vector<8x128xf32>
    %123 = vector.broadcast %0 : f32 to vector<8x128xf32>
    %124 = arith.mulf %101, %123 : vector<8x128xf32>
    %125 = vector.broadcast %48 : f32 to vector<8x128xf32>
    %126 = arith.addf %124, %125 : vector<8x128xf32>
    %127 = vector.broadcast %6 : f32 to vector<8x128xf32>
    %128 = arith.mulf %104, %127 : vector<8x128xf32>
    %129 = arith.addf %126, %128 : vector<8x128xf32>
    %130 = vector.broadcast %12 : f32 to vector<8x128xf32>
    %131 = arith.mulf %107, %130 : vector<8x128xf32>
    %132 = arith.addf %129, %131 : vector<8x128xf32>
    %133 = vector.broadcast %18 : f32 to vector<8x128xf32>
    %134 = arith.mulf %110, %133 : vector<8x128xf32>
    %135 = arith.addf %132, %134 : vector<8x128xf32>
    %136 = vector.broadcast %24 : f32 to vector<8x128xf32>
    %137 = arith.mulf %113, %136 : vector<8x128xf32>
    %138 = arith.addf %135, %137 : vector<8x128xf32>
    %139 = vector.broadcast %30 : f32 to vector<8x128xf32>
    %140 = arith.mulf %116, %139 : vector<8x128xf32>
    %141 = arith.addf %138, %140 : vector<8x128xf32>
    %142 = vector.broadcast %36 : f32 to vector<8x128xf32>
    %143 = arith.mulf %119, %142 : vector<8x128xf32>
    %144 = arith.addf %141, %143 : vector<8x128xf32>
    %145 = vector.broadcast %42 : f32 to vector<8x128xf32>
    %146 = arith.mulf %122, %145 : vector<8x128xf32>
    %147 = arith.addf %144, %146 : vector<8x128xf32>
    %148 = math.tanh %147 : vector<8x128xf32>
    %149 = vector.broadcast %1 : f32 to vector<8x128xf32>
    %150 = arith.mulf %101, %149 : vector<8x128xf32>
    %151 = vector.broadcast %49 : f32 to vector<8x128xf32>
    %152 = arith.addf %150, %151 : vector<8x128xf32>
    %153 = vector.broadcast %7 : f32 to vector<8x128xf32>
    %154 = arith.mulf %104, %153 : vector<8x128xf32>
    %155 = arith.addf %152, %154 : vector<8x128xf32>
    %156 = vector.broadcast %13 : f32 to vector<8x128xf32>
    %157 = arith.mulf %107, %156 : vector<8x128xf32>
    %158 = arith.addf %155, %157 : vector<8x128xf32>
    %159 = vector.broadcast %19 : f32 to vector<8x128xf32>
    %160 = arith.mulf %110, %159 : vector<8x128xf32>
    %161 = arith.addf %158, %160 : vector<8x128xf32>
    %162 = vector.broadcast %25 : f32 to vector<8x128xf32>
    %163 = arith.mulf %113, %162 : vector<8x128xf32>
    %164 = arith.addf %161, %163 : vector<8x128xf32>
    %165 = vector.broadcast %31 : f32 to vector<8x128xf32>
    %166 = arith.mulf %116, %165 : vector<8x128xf32>
    %167 = arith.addf %164, %166 : vector<8x128xf32>
    %168 = vector.broadcast %37 : f32 to vector<8x128xf32>
    %169 = arith.mulf %119, %168 : vector<8x128xf32>
    %170 = arith.addf %167, %169 : vector<8x128xf32>
    %171 = vector.broadcast %43 : f32 to vector<8x128xf32>
    %172 = arith.mulf %122, %171 : vector<8x128xf32>
    %173 = arith.addf %170, %172 : vector<8x128xf32>
    %174 = math.tanh %173 : vector<8x128xf32>
    %175 = vector.broadcast %2 : f32 to vector<8x128xf32>
    %176 = arith.mulf %101, %175 : vector<8x128xf32>
    %177 = vector.broadcast %50 : f32 to vector<8x128xf32>
    %178 = arith.addf %176, %177 : vector<8x128xf32>
    %179 = vector.broadcast %8 : f32 to vector<8x128xf32>
    %180 = arith.mulf %104, %179 : vector<8x128xf32>
    %181 = arith.addf %178, %180 : vector<8x128xf32>
    %182 = vector.broadcast %14 : f32 to vector<8x128xf32>
    %183 = arith.mulf %107, %182 : vector<8x128xf32>
    %184 = arith.addf %181, %183 : vector<8x128xf32>
    %185 = vector.broadcast %20 : f32 to vector<8x128xf32>
    %186 = arith.mulf %110, %185 : vector<8x128xf32>
    %187 = arith.addf %184, %186 : vector<8x128xf32>
    %188 = vector.broadcast %26 : f32 to vector<8x128xf32>
    %189 = arith.mulf %113, %188 : vector<8x128xf32>
    %190 = arith.addf %187, %189 : vector<8x128xf32>
    %191 = vector.broadcast %32 : f32 to vector<8x128xf32>
    %192 = arith.mulf %116, %191 : vector<8x128xf32>
    %193 = arith.addf %190, %192 : vector<8x128xf32>
    %194 = vector.broadcast %38 : f32 to vector<8x128xf32>
    %195 = arith.mulf %119, %194 : vector<8x128xf32>
    %196 = arith.addf %193, %195 : vector<8x128xf32>
    %197 = vector.broadcast %44 : f32 to vector<8x128xf32>
    %198 = arith.mulf %122, %197 : vector<8x128xf32>
    %199 = arith.addf %196, %198 : vector<8x128xf32>
    %200 = math.tanh %199 : vector<8x128xf32>
    %201 = vector.broadcast %3 : f32 to vector<8x128xf32>
    %202 = arith.mulf %101, %201 : vector<8x128xf32>
    %203 = vector.broadcast %51 : f32 to vector<8x128xf32>
    %204 = arith.addf %202, %203 : vector<8x128xf32>
    %205 = vector.broadcast %9 : f32 to vector<8x128xf32>
    %206 = arith.mulf %104, %205 : vector<8x128xf32>
    %207 = arith.addf %204, %206 : vector<8x128xf32>
    %208 = vector.broadcast %15 : f32 to vector<8x128xf32>
    %209 = arith.mulf %107, %208 : vector<8x128xf32>
    %210 = arith.addf %207, %209 : vector<8x128xf32>
    %211 = vector.broadcast %21 : f32 to vector<8x128xf32>
    %212 = arith.mulf %110, %211 : vector<8x128xf32>
    %213 = arith.addf %210, %212 : vector<8x128xf32>
    %214 = vector.broadcast %27 : f32 to vector<8x128xf32>
    %215 = arith.mulf %113, %214 : vector<8x128xf32>
    %216 = arith.addf %213, %215 : vector<8x128xf32>
    %217 = vector.broadcast %33 : f32 to vector<8x128xf32>
    %218 = arith.mulf %116, %217 : vector<8x128xf32>
    %219 = arith.addf %216, %218 : vector<8x128xf32>
    %220 = vector.broadcast %39 : f32 to vector<8x128xf32>
    %221 = arith.mulf %119, %220 : vector<8x128xf32>
    %222 = arith.addf %219, %221 : vector<8x128xf32>
    %223 = vector.broadcast %45 : f32 to vector<8x128xf32>
    %224 = arith.mulf %122, %223 : vector<8x128xf32>
    %225 = arith.addf %222, %224 : vector<8x128xf32>
    %226 = math.tanh %225 : vector<8x128xf32>
    %227 = vector.broadcast %4 : f32 to vector<8x128xf32>
    %228 = arith.mulf %101, %227 : vector<8x128xf32>
    %229 = vector.broadcast %52 : f32 to vector<8x128xf32>
    %230 = arith.addf %228, %229 : vector<8x128xf32>
    %231 = vector.broadcast %10 : f32 to vector<8x128xf32>
    %232 = arith.mulf %104, %231 : vector<8x128xf32>
    %233 = arith.addf %230, %232 : vector<8x128xf32>
    %234 = vector.broadcast %16 : f32 to vector<8x128xf32>
    %235 = arith.mulf %107, %234 : vector<8x128xf32>
    %236 = arith.addf %233, %235 : vector<8x128xf32>
    %237 = vector.broadcast %22 : f32 to vector<8x128xf32>
    %238 = arith.mulf %110, %237 : vector<8x128xf32>
    %239 = arith.addf %236, %238 : vector<8x128xf32>
    %240 = vector.broadcast %28 : f32 to vector<8x128xf32>
    %241 = arith.mulf %113, %240 : vector<8x128xf32>
    %242 = arith.addf %239, %241 : vector<8x128xf32>
    %243 = vector.broadcast %34 : f32 to vector<8x128xf32>
    %244 = arith.mulf %116, %243 : vector<8x128xf32>
    %245 = arith.addf %242, %244 : vector<8x128xf32>
    %246 = vector.broadcast %40 : f32 to vector<8x128xf32>
    %247 = arith.mulf %119, %246 : vector<8x128xf32>
    %248 = arith.addf %245, %247 : vector<8x128xf32>
    %249 = vector.broadcast %46 : f32 to vector<8x128xf32>
    %250 = arith.mulf %122, %249 : vector<8x128xf32>
    %251 = arith.addf %248, %250 : vector<8x128xf32>
    %252 = math.tanh %251 : vector<8x128xf32>
    %253 = vector.broadcast %5 : f32 to vector<8x128xf32>
    %254 = arith.mulf %101, %253 : vector<8x128xf32>
    %255 = vector.broadcast %53 : f32 to vector<8x128xf32>
    %256 = arith.addf %254, %255 : vector<8x128xf32>
    %257 = vector.broadcast %11 : f32 to vector<8x128xf32>
    %258 = arith.mulf %104, %257 : vector<8x128xf32>
    %259 = arith.addf %256, %258 : vector<8x128xf32>
    %260 = vector.broadcast %17 : f32 to vector<8x128xf32>
    %261 = arith.mulf %107, %260 : vector<8x128xf32>
    %262 = arith.addf %259, %261 : vector<8x128xf32>
    %263 = vector.broadcast %23 : f32 to vector<8x128xf32>
    %264 = arith.mulf %110, %263 : vector<8x128xf32>
    %265 = arith.addf %262, %264 : vector<8x128xf32>
    %266 = vector.broadcast %29 : f32 to vector<8x128xf32>
    %267 = arith.mulf %113, %266 : vector<8x128xf32>
    %268 = arith.addf %265, %267 : vector<8x128xf32>
    %269 = vector.broadcast %35 : f32 to vector<8x128xf32>
    %270 = arith.mulf %116, %269 : vector<8x128xf32>
    %271 = arith.addf %268, %270 : vector<8x128xf32>
    %272 = vector.broadcast %41 : f32 to vector<8x128xf32>
    %273 = arith.mulf %119, %272 : vector<8x128xf32>
    %274 = arith.addf %271, %273 : vector<8x128xf32>
    %275 = vector.broadcast %47 : f32 to vector<8x128xf32>
    %276 = arith.mulf %122, %275 : vector<8x128xf32>
    %277 = arith.addf %274, %276 : vector<8x128xf32>
    %278 = math.tanh %277 : vector<8x128xf32>
    %279 = vector.broadcast %54 : f32 to vector<8x128xf32>
    %280 = arith.mulf %148, %279 : vector<8x128xf32>
    %281 = vector.broadcast %78 : f32 to vector<8x128xf32>
    %282 = arith.addf %280, %281 : vector<8x128xf32>
    %283 = vector.broadcast %58 : f32 to vector<8x128xf32>
    %284 = arith.mulf %174, %283 : vector<8x128xf32>
    %285 = arith.addf %282, %284 : vector<8x128xf32>
    %286 = vector.broadcast %62 : f32 to vector<8x128xf32>
    %287 = arith.mulf %200, %286 : vector<8x128xf32>
    %288 = arith.addf %285, %287 : vector<8x128xf32>
    %289 = vector.broadcast %66 : f32 to vector<8x128xf32>
    %290 = arith.mulf %226, %289 : vector<8x128xf32>
    %291 = arith.addf %288, %290 : vector<8x128xf32>
    %292 = vector.broadcast %70 : f32 to vector<8x128xf32>
    %293 = arith.mulf %252, %292 : vector<8x128xf32>
    %294 = arith.addf %291, %293 : vector<8x128xf32>
    %295 = vector.broadcast %74 : f32 to vector<8x128xf32>
    %296 = arith.mulf %278, %295 : vector<8x128xf32>
    %297 = arith.addf %294, %296 : vector<8x128xf32>
    %298 = math.tanh %297 : vector<8x128xf32>
    %299 = vector.broadcast %55 : f32 to vector<8x128xf32>
    %300 = arith.mulf %148, %299 : vector<8x128xf32>
    %301 = vector.broadcast %79 : f32 to vector<8x128xf32>
    %302 = arith.addf %300, %301 : vector<8x128xf32>
    %303 = vector.broadcast %59 : f32 to vector<8x128xf32>
    %304 = arith.mulf %174, %303 : vector<8x128xf32>
    %305 = arith.addf %302, %304 : vector<8x128xf32>
    %306 = vector.broadcast %63 : f32 to vector<8x128xf32>
    %307 = arith.mulf %200, %306 : vector<8x128xf32>
    %308 = arith.addf %305, %307 : vector<8x128xf32>
    %309 = vector.broadcast %67 : f32 to vector<8x128xf32>
    %310 = arith.mulf %226, %309 : vector<8x128xf32>
    %311 = arith.addf %308, %310 : vector<8x128xf32>
    %312 = vector.broadcast %71 : f32 to vector<8x128xf32>
    %313 = arith.mulf %252, %312 : vector<8x128xf32>
    %314 = arith.addf %311, %313 : vector<8x128xf32>
    %315 = vector.broadcast %75 : f32 to vector<8x128xf32>
    %316 = arith.mulf %278, %315 : vector<8x128xf32>
    %317 = arith.addf %314, %316 : vector<8x128xf32>
    %318 = math.tanh %317 : vector<8x128xf32>
    %319 = vector.broadcast %56 : f32 to vector<8x128xf32>
    %320 = arith.mulf %148, %319 : vector<8x128xf32>
    %321 = vector.broadcast %80 : f32 to vector<8x128xf32>
    %322 = arith.addf %320, %321 : vector<8x128xf32>
    %323 = vector.broadcast %60 : f32 to vector<8x128xf32>
    %324 = arith.mulf %174, %323 : vector<8x128xf32>
    %325 = arith.addf %322, %324 : vector<8x128xf32>
    %326 = vector.broadcast %64 : f32 to vector<8x128xf32>
    %327 = arith.mulf %200, %326 : vector<8x128xf32>
    %328 = arith.addf %325, %327 : vector<8x128xf32>
    %329 = vector.broadcast %68 : f32 to vector<8x128xf32>
    %330 = arith.mulf %226, %329 : vector<8x128xf32>
    %331 = arith.addf %328, %330 : vector<8x128xf32>
    %332 = vector.broadcast %72 : f32 to vector<8x128xf32>
    %333 = arith.mulf %252, %332 : vector<8x128xf32>
    %334 = arith.addf %331, %333 : vector<8x128xf32>
    %335 = vector.broadcast %76 : f32 to vector<8x128xf32>
    %336 = arith.mulf %278, %335 : vector<8x128xf32>
    %337 = arith.addf %334, %336 : vector<8x128xf32>
    %338 = math.tanh %337 : vector<8x128xf32>
    %339 = vector.broadcast %57 : f32 to vector<8x128xf32>
    %340 = arith.mulf %148, %339 : vector<8x128xf32>
    %341 = vector.broadcast %81 : f32 to vector<8x128xf32>
    %342 = arith.addf %340, %341 : vector<8x128xf32>
    %343 = vector.broadcast %61 : f32 to vector<8x128xf32>
    %344 = arith.mulf %174, %343 : vector<8x128xf32>
    %345 = arith.addf %342, %344 : vector<8x128xf32>
    %346 = vector.broadcast %65 : f32 to vector<8x128xf32>
    %347 = arith.mulf %200, %346 : vector<8x128xf32>
    %348 = arith.addf %345, %347 : vector<8x128xf32>
    %349 = vector.broadcast %69 : f32 to vector<8x128xf32>
    %350 = arith.mulf %226, %349 : vector<8x128xf32>
    %351 = arith.addf %348, %350 : vector<8x128xf32>
    %352 = vector.broadcast %73 : f32 to vector<8x128xf32>
    %353 = arith.mulf %252, %352 : vector<8x128xf32>
    %354 = arith.addf %351, %353 : vector<8x128xf32>
    %355 = vector.broadcast %77 : f32 to vector<8x128xf32>
    %356 = arith.mulf %278, %355 : vector<8x128xf32>
    %357 = arith.addf %354, %356 : vector<8x128xf32>
    %358 = math.tanh %357 : vector<8x128xf32>
    %359 = vector.broadcast %82 : f32 to vector<8x128xf32>
    %360 = arith.mulf %298, %359 : vector<8x128xf32>
    %361 = vector.broadcast %90 : f32 to vector<8x128xf32>
    %362 = arith.addf %360, %361 : vector<8x128xf32>
    %363 = vector.broadcast %84 : f32 to vector<8x128xf32>
    %364 = arith.mulf %318, %363 : vector<8x128xf32>
    %365 = arith.addf %362, %364 : vector<8x128xf32>
    %366 = vector.broadcast %86 : f32 to vector<8x128xf32>
    %367 = arith.mulf %338, %366 : vector<8x128xf32>
    %368 = arith.addf %365, %367 : vector<8x128xf32>
    %369 = vector.broadcast %88 : f32 to vector<8x128xf32>
    %370 = arith.mulf %358, %369 : vector<8x128xf32>
    %371 = arith.addf %368, %370 : vector<8x128xf32>
    %372 = math.tanh %371 : vector<8x128xf32>
    %373 = vector.broadcast %83 : f32 to vector<8x128xf32>
    %374 = arith.mulf %298, %373 : vector<8x128xf32>
    %375 = vector.broadcast %91 : f32 to vector<8x128xf32>
    %376 = arith.addf %374, %375 : vector<8x128xf32>
    %377 = vector.broadcast %85 : f32 to vector<8x128xf32>
    %378 = arith.mulf %318, %377 : vector<8x128xf32>
    %379 = arith.addf %376, %378 : vector<8x128xf32>
    %380 = vector.broadcast %87 : f32 to vector<8x128xf32>
    %381 = arith.mulf %338, %380 : vector<8x128xf32>
    %382 = arith.addf %379, %381 : vector<8x128xf32>
    %383 = vector.broadcast %89 : f32 to vector<8x128xf32>
    %384 = arith.mulf %358, %383 : vector<8x128xf32>
    %385 = arith.addf %382, %384 : vector<8x128xf32>
    %386 = math.tanh %385 : vector<8x128xf32>
    %387 = vector.broadcast %92 : f32 to vector<8x128xf32>
    %388 = arith.mulf %372, %387 : vector<8x128xf32>
    %389 = vector.broadcast %94 : f32 to vector<8x128xf32>
    %390 = arith.addf %388, %389 : vector<8x128xf32>
    %391 = vector.broadcast %93 : f32 to vector<8x128xf32>
    %392 = arith.mulf %386, %391 : vector<8x128xf32>
    %393 = arith.addf %390, %392 : vector<8x128xf32>
    %394 = math.tanh %393 : vector<8x128xf32>
    %cst = arith.constant 5.000000e-01 : f32
    %395 = vector.broadcast %cst : f32 to vector<8x128xf32>
    %396 = arith.mulf %395, %394 : vector<8x128xf32>
    %cst_17 = arith.constant 5.000000e-01 : f32
    %397 = vector.broadcast %cst_17 : f32 to vector<8x128xf32>
    %398 = arith.addf %396, %397 : vector<8x128xf32>
    %399 = arith.index_cast %98 : i32 to index
    %c0_18 = arith.constant 0 : index
    %400 = vector.load %arg3[%399, %c0_18] : memref<8x128xf32, #tpu.memory_space<vmem>>, vector<8x128xf32>
    tpu.vector_store %arg3[%399, %c0_18], %398 {strides = array<i32>} : memref<8x128xf32, #tpu.memory_space<vmem>>, vector<8x128xf32>,
    %c1_i32_19 = arith.constant 1 : i32
    return
  }
  func.func @transform_0(%arg0: i32) -> i32 {
    %c0_i32 = arith.constant 0 : i32
    %c0_i32_0 = arith.constant 0 : i32
    return %c0_i32 : i32
  }
  func.func @transform_1(%arg0: i32) -> (i32, i32, i32) {
    %c0_i32 = arith.constant 0 : i32
    %c0_i32_0 = arith.constant 0 : i32
    %c0_i32_1 = arith.constant 0 : i32
    return %c0_i32, %arg0, %c0_i32_0 : i32, i32, i32
  }
  func.func @transform_2(%arg0: i32) -> (i32, i32) {
    %c0_i32 = arith.constant 0 : i32
    %c0_i32_0 = arith.constant 0 : i32
    return %arg0, %c0_i32 : i32, i32
  }
}

</mosaic_0001>

<bundles_post_ra>
// kernel: tpu_custom_call.1
= control target key start
LH: loop header
LB: loop body
LE: loop exit
PB: predicated region body
PF: predicated region fallthrough
CT: control target
= control target key end

     0   :  { %s1038_s0 = inlined_call_operand.hbm [shape: f32[95], index: 0, kind: input, shape index: {}]   ;;  %s1039_s1 = inlined_call_operand.hbm [shape: f32[8,8,128], index: 1, kind: input, shape index: {}]   ;;  %s1040_s2 = inlined_call_operand.hbm [shape: f32[8,128], index: 2, kind: output, shape index: {}]  }
   0x1   :  { %1041 = sst [smem:[#allocation14_spill]] %s1040_s2 }
   0x2   :  { %7 = vsyncpa [#allocation5], 0 }
   0x3   :  { %8 = vsyncpa [#allocation3], 0 }
   0x4   :  { %9 = vsyncpa [#allocation4], 0  ;;  %s631_s9 = smov [#allocation2]   ;;  %s632_s12 = smov [#allocation6]  }
   0x5   :  { %17 = dma.hbm_to_smem %s1038_s0, 16, %s631_s9, [#allocation5]  }
   0x6   :  { %s23_s13 = sshll.u32 %s632_s12, 4  ;;  %s24_s13 = int_to_ptr.vmem [resolvable:$true] %s23_s13 }
   0x7   :  { %s593_s14 = scalar_lea.vmem %s24_s13, 1024  ;;  %p598_p1 = scmp.lt.s32.totalorder %s24_s13, %s24_s13 }
   0x8   :  { %p594_p0 = scmp.ne.s32.totalorder %s24_s13, %s593_s14  ;;  %p599_p2 = scmp.lt.s32.totalorder %s593_s14, %s593_s14 }
   0xa   :  { %p600_p3 = por %p599_p2, %p598_p1 }
   0xc   :  { %p601_p4 = pnand %p600_p3, %p594_p0 }
   0xe   :  { %604 = shalt.err (!%p601_p4)
}
   0xf   :  { %s633_s15 = smov 128   ;;  %s634_s16 = smov 8  }
  0x10   :  { %29 = dma.hbm_to_vmem [thread:$0]  %s1039_s1, 1024, %s24_s13, [#allocation3], %s633_s15, %s633_s15, %s634_s16  }
  0x11   :  { %625 = dma.done.wait [#allocation5], 16  }
  0x12   :  { %626 = vsyncadd [#allocation5], 4294967280 }
  0x13   :  { %627 = dma.done.wait [#allocation3], 1024  }
  0x14   :  { %628 = vsyncadd [#allocation3], 4294966272 }
  0x15   :  { %36 = sfence }
  0x16   :  { %s657_s0 = sld [smem:[#allocation2]]  ;;  %v132_v0 = vld [vmem:[#allocation6] sm:$0xff]  ;;  %v135_v9 = vld [vmem:[#allocation6 + $0x8] sm:$0xff]  ;;  %v138_v18 = vld [vmem:[#allocation6 + $0x10] sm:$0xff] }
  0x17   :  { %s659_s19 = sld [smem:[#allocation2 + $0x1]]  ;;  %v141_v35 = vld [vmem:[#allocation6 + $0x18] sm:$0xff]  ;;  %v144_v44 = vld [vmem:[#allocation6 + $0x20] sm:$0xff]  ;;  %v147_v61 = vld [vmem:[#allocation6 + $0x28] sm:$0xff] }
  0x18   :  { %s661_s20 = sld [smem:[#allocation2 + $0x2]] }
  0x19   :  { %s663_s21 = sld [smem:[#allocation2 + $0x3]] }
  0x1a   :  { %s665_s22 = sld [smem:[#allocation2 + $0x4]] }
  0x1b   :  { %s667_s23 = sld [smem:[#allocation2 + $0x5]] }
  0x1c   :  { %s669_s24 = sld [smem:[#allocation2 + $0x6]]  ;;  %v154_v1 = vstv %s657_s0 }
  0x1d   :  { %s671_s1 = sld [smem:[#allocation2 + $0x7]]  ;;  %v180_v2 = vstv %s659_s19  ;;  %v730_v6 = vmul.f32 %v154_v1, %v132_v0 }
  0x1e   :  { %s673_s25 = sld [smem:[#allocation2 + $0x8]]  ;;  %v206_v3 = vstv %s661_s20  ;;  %v732_v7 = vmul.f32 %v180_v2, %v132_v0 }
  0x1f   :  { %s675_s26 = sld [smem:[#allocation2 + $0x9]]  ;;  %v232_v4 = vstv %s663_s21  ;;  %v739_v12 = vmul.f32 %v206_v3, %v132_v0 }
  0x20   :  { %s677_s27 = sld [smem:[#allocation2 + $0xa]]  ;;  %v258_v5 = vstv %s665_s22  ;;  %v744_v14 = vmul.f32 %v232_v4, %v132_v0 }
  0x21   :  { %s679_s28 = sld [smem:[#allocation2 + $0xb]]  ;;  %v284_v8 = vstv %s667_s23  ;;  %v747_v16 = vmul.f32 %v258_v5, %v132_v0 }
  0x22   :  { %s681_s29 = sld [smem:[#allocation2 + $0xc]]  ;;  %v158_v10 = vstv %s669_s24  ;;  %v754_v21 = vmul.f32 %v284_v8, %v132_v0  ;;  %v150_v8 = vld [vmem:[#allocation6 + $0x30] sm:$0xff] }
  0x23   :  { %s683_s30 = sld [smem:[#allocation2 + $0xd]]  ;;  %v184_v11 = vstv %s671_s1  ;;  %v759_v23 = vmul.f32 %v158_v10, %v135_v9 }
  0x24   :  { %s685_s3 = sld [smem:[#allocation2 + $0xe]]  ;;  %v210_v13 = vstv %s673_s25  ;;  %v761_v24 = vmul.f32 %v184_v11, %v135_v9 }
  0x25   :  { %s687_s4 = sld [smem:[#allocation2 + $0xf]]  ;;  %v236_v15 = vstv %s675_s26  ;;  %v763_v25 = vmul.f32 %v210_v13, %v135_v9 }
  0x26   :  { %s689_s5 = sld [smem:[#allocation2 + $0x10]]  ;;  %v262_v17 = vstv %s677_s27  ;;  %v768_v27 = vmul.f32 %v236_v15, %v135_v9 }
  0x27   :  { %s691_s6 = sld [smem:[#allocation2 + $0x11]]  ;;  %v288_v22 = vstv %s679_s28  ;;  %v771_v29 = vmul.f32 %v262_v17, %v135_v9 }
  0x28   :  { %s693_s7 = sld [smem:[#allocation2 + $0x12]]  ;;  %v161_v19 = vstv %s681_s29  ;;  %v780_v33 = vmul.f32 %v288_v22, %v135_v9 }
  0x29   :  { %s695_s8 = sld [smem:[#allocation2 + $0x13]]  ;;  %v187_v20 = vstv %s683_s30  ;;  %v776_v31 = vmul.f32 %v161_v19, %v138_v18 }
  0x2a   :  { %s697_s9 = sld [smem:[#allocation2 + $0x14]]  ;;  %v213_v26 = vstv %s685_s3  ;;  %v778_v32 = vmul.f32 %v187_v20, %v138_v18 }
  0x2b   :  { %s699_s10 = sld [smem:[#allocation2 + $0x15]]  ;;  %v239_v28 = vstv %s687_s4  ;;  %v787_v38 = vmul.f32 %v213_v26, %v138_v18 }
  0x2c   :  { %s701_s11 = sld [smem:[#allocation2 + $0x16]]  ;;  %v265_v30 = vstv %s689_s5  ;;  %v792_v40 = vmul.f32 %v239_v28, %v138_v18 }
  0x2d   :  { %s703_s12 = sld [smem:[#allocation2 + $0x17]]  ;;  %v291_v34 = vstv %s691_s6  ;;  %v795_v42 = vmul.f32 %v265_v30, %v138_v18 }
  0x2e   :  { %s705_s13 = sld [smem:[#allocation2 + $0x18]]  ;;  %v164_v36 = vstv %s693_s7  ;;  %v802_v47 = vmul.f32 %v291_v34, %v138_v18 }
  0x2f   :  { %s707_s14 = sld [smem:[#allocation2 + $0x19]]  ;;  %v190_v37 = vstv %s695_s8  ;;  %v807_v49 = vmul.f32 %v164_v36, %v141_v35 }
  0x30   :  { %s709_s15 = sld [smem:[#allocation2 + $0x1a]]  ;;  %v216_v39 = vstv %s697_s9  ;;  %v809_v50 = vmul.f32 %v190_v37, %v141_v35 }
  0x31   :  { %s711_s16 = sld [smem:[#allocation2 + $0x1b]]  ;;  %v242_v41 = vstv %s699_s10  ;;  %v811_v51 = vmul.f32 %v216_v39, %v141_v35 }
  0x32   :  { %s713_s17 = sld [smem:[#allocation2 + $0x1c]]  ;;  %v268_v43 = vstv %s701_s11  ;;  %v816_v53 = vmul.f32 %v242_v41, %v141_v35 }
  0x33   :  { %1042 = sst [smem:[#allocation11_spill]] %s703_s12  ;;  %v819_v55 = vmul.f32 %v268_v43, %v141_v35 }
  0x34   :  { %s715_s18 = sld [smem:[#allocation2 + $0x1d]]  ;;  %v167_v45 = vstv %s705_s13 }
  0x35   :  { %s717_s2 = sld [smem:[#allocation2 + $0x1e]]  ;;  %v193_v46 = vstv %s707_s14  ;;  %v824_v57 = vmul.f32 %v167_v45, %v144_v44 }
  0x36   :  { %1043 = sst [smem:[#allocation12_spill]] %s709_s15  ;;  %v826_v58 = vmul.f32 %v193_v46, %v144_v44 }
  0x37   :  { %s721_s12 = sld [smem:[#allocation2 + $0x1f]]  ;;  %v245_v54 = vstv %s711_s16 }
  0x38   :  { %1044 = sst [smem:[#allocation13_spill]] %s713_s17  ;;  %v840_v2 = vmul.f32 %v245_v54, %v144_v44 }
  0x39   :  { %s724_s15 = sld [smem:[#allocation2 + $0x20]] }
  0x3a   :  { %s728_s17 = sld [smem:[#allocation2 + $0x21]]  ;;  %v297_v60 = vstv %s715_s18 }
  0x3b   :  { %s735_s0 = sld [smem:[#allocation2 + $0x22]]  ;;  %v170_v62 = vstv %s717_s2  ;;  %v850_v11 = vmul.f32 %v297_v60, %v144_v44 }
  0x3c   :  { %s742_s19 = sld [smem:[#allocation2 + $0x23]]  ;;  %v855_v15 = vmul.f32 %v170_v62, %v147_v61 }
  0x3d   :  { %s750_s20 = sld [smem:[#allocation2 + $0x24]]  ;;  %v196_v63 = vstv %s721_s12 }
  0x3e   :  { %s757_s21 = sld [smem:[#allocation2 + $0x25]]  ;;  %v857_v17 = vmul.f32 %v196_v63, %v147_v61  ;;  %v153_v63 = vld [vmem:[#allocation6 + $0x38] sm:$0xff] }
  0x3f   :  { %s766_s22 = sld [smem:[#allocation2 + $0x26]]  ;;  %v222_v1 = vstv %s724_s15 }
  0x40   :  { %s774_s23 = sld [smem:[#allocation2 + $0x27]]  ;;  %v248_v3 = vstv %s728_s17  ;;  %v859_v18 = vmul.f32 %v222_v1, %v147_v61 }
  0x41   :  { %s783_s24 = sld [smem:[#allocation2 + $0x28]]  ;;  %v274_v5 = vstv %s735_s0  ;;  %v864_v20 = vmul.f32 %v248_v3, %v147_v61 }
  0x42   :  { %s1045_s1 = sld [smem:[#allocation11_spill]]  ;;  %v300_v13 = vstv %s742_s19  ;;  %v867_v26 = vmul.f32 %v274_v5, %v147_v61 }
  0x43   :  { %s1046_s25 = sld [smem:[#allocation12_spill]]  ;;  %v173_v9 = vstv %s750_s20  ;;  %v877_v36 = vmul.f32 %v300_v13, %v147_v61 }
  0x44   :  { %s790_s26 = sld [smem:[#allocation2 + $0x29]]  ;;  %v199_v10 = vstv %s757_s21  ;;  %v873_v34 = vmul.f32 %v173_v9, %v150_v8 }
  0x45   :  { %s1047_s27 = sld [smem:[#allocation13_spill]]  ;;  %v225_v19 = vstv %s766_s22 }
  0x46   :  { %s798_s28 = sld [smem:[#allocation2 + $0x2a]]  ;;  %v251_v22 = vstv %s774_s23  ;;  %v883_v41 = vmul.f32 %v225_v19, %v150_v8 }
  0x47   :  { %s805_s29 = sld [smem:[#allocation2 + $0x2b]]  ;;  %v277_v28 = vstv %s783_s24  ;;  %v890_v46 = vmul.f32 %v251_v22, %v150_v8 }
  0x48   :  { %v294_v48 = vstv %s1045_s1  ;;  %s814_s30 = sld [smem:[#allocation2 + $0x2c]] }
  0x49   :  { %v219_v52 = vstv %s1046_s25  ;;  %s822_s3 = sld [smem:[#allocation2 + $0x30]]  ;;  %v828_v59 = vmul.f32 %v294_v48, %v141_v35  ;;  %v875_v35 = vmul.f32 %v199_v10, %v150_v8  ;;  %v892_v48 = vmul.f32 %v277_v28, %v150_v8 }
  0x4a   :  { %s831_s4 = sld [smem:[#allocation2 + $0x31]]  ;;  %v835_v0 = vmul.f32 %v219_v52, %v144_v44  ;;  %v303_v43 = vstv %s790_s26 }
  0x4b   :  { %v271_v56 = vstv %s1047_s27  ;;  %s838_s5 = sld [smem:[#allocation2 + $0x32]]  ;;  %v905_v62 = vmul.f32 %v303_v43, %v150_v8 }
  0x4c   :  { %v843_v4 = vmul.f32 %v271_v56, %v144_v44  ;;  %s846_s6 = sld [smem:[#allocation2 + $0x33]] }
  0x4d   :  { %s853_s2 = sld [smem:[#allocation2 + $0x34]]  ;;  %v202_v5 = vstv %s805_s29 }
  0x4e   :  { %s862_s7 = sld [smem:[#allocation2 + $0x35]]  ;;  %v228_v10 = vstv %s814_s30 }
  0x4f   :  { %s870_s8 = sld [smem:[#allocation2 + $0x2d]]  ;;  %v156_v30 = vstv %s822_s3 }
  0x50   :  { %s879_s9 = sld [smem:[#allocation2 + $0x2e]]  ;;  %v157_v37 = vadd.f32 %v156_v30, %v730_v6  ;;  %v182_v39 = vstv %s831_s4  ;;  %v176_v6 = vstv %s798_s28 }
  0x51   :  { %s886_s10 = sld [smem:[#allocation2 + $0x2f]]  ;;  %v183_v44 = vadd.f32 %v182_v39, %v732_v7  ;;  %v208_v45 = vstv %s838_s5 }
  0x52   :  { %s894_s11 = sld [smem:[#allocation2 + $0x36]]  ;;  %v160_v52 = vadd.f32 %v759_v23, %v157_v37  ;;  %v209_v54 = vadd.f32 %v208_v45, %v739_v12  ;;  %v234_v56 = vstv %s846_s6 }
  0x53   :  { %s900_s12 = sld [smem:[#allocation2 + $0x37]]  ;;  %v186_v60 = vadd.f32 %v761_v24, %v183_v44  ;;  %v235_v7 = vadd.f32 %v234_v56, %v744_v14  ;;  %v260_v61 = vstv %s853_s2 }
  0x54   :  { %s907_s13 = sld [smem:[#allocation2 + $0x38]]  ;;  %v163_v23 = vadd.f32 %v776_v31, %v160_v52  ;;  %v212_v1 = vadd.f32 %v763_v25, %v209_v54  ;;  %v261_v12 = vadd.f32 %v260_v61, %v747_v16  ;;  %v286_v3 = vstv %s862_s7 }
  0x55   :  { %s913_s14 = sld [smem:[#allocation2 + $0x39]]  ;;  %v189_v24 = vadd.f32 %v778_v32, %v186_v60  ;;  %v238_v14 = vadd.f32 %v768_v27, %v235_v7  ;;  %v287_v8 = vadd.f32 %v286_v3, %v754_v21  ;;  %v177_v16 = vmul.f32 %v176_v6, %v153_v63 }
  0x56   :  { %s919_s15 = sld [smem:[#allocation2 + $0x3a]]  ;;  %v166_v9 = vadd.f32 %v807_v49, %v163_v23  ;;  %v215_v31 = vadd.f32 %v787_v38, %v212_v1  ;;  %v264_v25 = vadd.f32 %v771_v29, %v261_v12  ;;  %v203_v49 = vmul.f32 %v202_v5, %v153_v63 }
  0x57   :  { %s925_s16 = sld [smem:[#allocation2 + $0x3b]]  ;;  %v192_v13 = vadd.f32 %v809_v50, %v189_v24  ;;  %v241_v32 = vadd.f32 %v792_v40, %v238_v14  ;;  %v290_v27 = vadd.f32 %v780_v33, %v287_v8  ;;  %v229_v50 = vmul.f32 %v228_v10, %v153_v63 }
  0x58   :  { %s930_s17 = sld [smem:[#allocation2 + $0x3c]]  ;;  %v169_v21 = vadd.f32 %v824_v57, %v166_v9  ;;  %v218_v38 = vadd.f32 %v811_v51, %v215_v31  ;;  %v267_v29 = vadd.f32 %v795_v42, %v264_v25  ;;  %v254_v28 = vstv %s870_s8 }
  0x59   :  { %s935_s18 = sld [smem:[#allocation2 + $0x3d]]  ;;  %v195_v19 = vadd.f32 %v826_v58, %v192_v13  ;;  %v244_v22 = vadd.f32 %v816_v53, %v241_v32  ;;  %v293_v33 = vadd.f32 %v802_v47, %v290_v27  ;;  %v280_v30 = vstv %s879_s9 }
  0x5a   :  { %s940_s0 = sld [smem:[#allocation2 + $0x3e]]  ;;  %v172_v40 = vadd.f32 %v855_v15, %v169_v21  ;;  %v221_v57 = vadd.f32 %v835_v0, %v218_v38  ;;  %v270_v51 = vadd.f32 %v819_v55, %v267_v29  ;;  %v306_v37 = vstv %s886_s10 }
  0x5b   :  { %s946_s19 = sld [smem:[#allocation2 + $0x3f]]  ;;  %v198_v42 = vadd.f32 %v857_v17, %v195_v19  ;;  %v247_v58 = vadd.f32 %v840_v2, %v244_v22  ;;  %v296_v53 = vadd.f32 %v828_v59, %v293_v33  ;;  %v255_v39 = vmul.f32 %v254_v28, %v153_v63 }
  0x5c   :  { %s952_s20 = sld [smem:[#allocation2 + $0x40]]  ;;  %v175_v47 = vadd.f32 %v873_v34, %v172_v40  ;;  %v224_v15 = vadd.f32 %v859_v18, %v221_v57  ;;  %v273_v0 = vadd.f32 %v843_v4, %v270_v51  ;;  %v281_v18 = vmul.f32 %v280_v30, %v153_v63 }
  0x5d   :  { %s958_s21 = sld [smem:[#allocation2 + $0x41]]  ;;  %v201_v55 = vadd.f32 %v875_v35, %v198_v42  ;;  %v250_v17 = vadd.f32 %v864_v20, %v247_v58  ;;  %v299_v2 = vadd.f32 %v850_v11, %v296_v53  ;;  %v307_v45 = vmul.f32 %v306_v37, %v153_v63 }
  0x5e   :  { %s963_s22 = sld [smem:[#allocation2 + $0x42]]  ;;  %v178_v59 = vadd.f32 %v177_v16, %v175_v47  ;;  %v227_v43 = vadd.f32 %v883_v41, %v224_v15  ;;  %v276_v34 = vadd.f32 %v867_v26, %v273_v0  ;;  %v330_v52 = vstv %s900_s12 }
  0x5f   :  { %s967_s23 = sld [smem:[#allocation2 + $0x43]]  ;;  %v204_v4 = vadd.f32 %v203_v49, %v201_v55  ;;  %v253_v44 = vadd.f32 %v890_v46, %v250_v17  ;;  %v302_v35 = vadd.f32 %v877_v36, %v299_v2  ;;  %v350_v6 = vstv %s907_s13 }
  0x60   :  { %s971_s24 = sld [smem:[#allocation2 + $0x44]]  ;;  %551 = vtanh.f32 %v178_v59  ;;  %v230_v11 = vadd.f32 %v229_v50, %v227_v43  ;;  %v279_v20 = vadd.f32 %v892_v48, %v276_v34  ;;  %v310_v48 = vstv %s894_s11 }
  0x61   :  { %s974_s1 = sld [smem:[#allocation2 + $0x45]]  ;;  %553 = vtanh.f32 %v204_v4  ;;  %v256_v41 = vadd.f32 %v255_v39, %v253_v44  ;;  %v305_v26 = vadd.f32 %v905_v62, %v302_v35  ;;  %v370_v54 = vstv %s913_s14 }
  0x62   :  { %s977_s25 = sld [smem:[#allocation2 + $0x46]]  ;;  %555 = vtanh.f32 %v230_v11  ;;  %v282_v36 = vadd.f32 %v281_v18, %v279_v20  ;;  %v314_v56 = vstv %s919_s15  ;;  %v334_v60 = vstv %s925_s16 }
  0x63   :  { %s979_s26 = sld [smem:[#allocation2 + $0x47]]  ;;  %557 = vtanh.f32 %v256_v41  ;;  %v308_v46 = vadd.f32 %v307_v45, %v305_v26  ;;  %v354_v7 = vstv %s930_s17  ;;  %v374_v61 = vstv %s935_s18 }
  0x64   :  { %s981_s27 = sld [smem:[#allocation2 + $0x48]]  ;;  %559 = vtanh.f32 %v282_v36  ;;  %v317_v62 = vstv %s940_s0  ;;  %v337_v63 = vstv %s946_s19  ;;  %v357_v23 = vstv %s952_s20  ;;  %s635_s20 = smov [#allocation7]  }
  0x65   :  { %s983_s28 = sld [smem:[#allocation2 + $0x4a]]  ;;  %561 = vtanh.f32 %v308_v46  ;;  %v377_v1 = vstv %s958_s21  ;;  %v320_v12 = vstv %s963_s22  ;;  %v340_v3 = vstv %s967_s23  ;;  %s435_s21 = sshll.u32 %s635_s20, 4  ;;  %s436_s21 = int_to_ptr.vmem [resolvable:$true] %s435_s21 }
  0x66   :  { %s985_s29 = sld [smem:[#allocation2 + $0x4b]]  ;;  %v360_v24 = vstv %s971_s24  ;;  %s605_s22 = scalar_lea.vmem %s436_s21, 128 }
  0x67   :  { %s987_s30 = sld [smem:[#allocation2 + $0x4e]]  ;;  %v380_v5 = vstv %s974_s1  ;;  %p606_p5 = scmp.ne.s32.totalorder %s436_s21, %s605_s22 }
  0x68   :  { %s989_s3 = sld [smem:[#allocation2 + $0x4f]]  ;;  %v323_v9 = vstv %s977_s25  ;;  %p610_p6 = scmp.lt.s32.totalorder %s436_s21, %s436_s21 }
  0x69   :  { %s991_s4 = sld [smem:[#allocation2 + $0x50]]  ;;  %v343_v31 = vstv %s979_s26  ;;  %p611_p7 = scmp.lt.s32.totalorder %s605_s22, %s605_s22 }
  0x6a   :  { %s1001_s5 = sld [smem:[#allocation2 + $0x4c]]  ;;  %v363_v10 = vstv %s981_s27 }
  0x6b   :  { %s1011_s6 = sld [smem:[#allocation2 + $0x51]]  ;;  %v326_v51 = vstv %s983_s28  ;;  %p612_p8 = por %p611_p7, %p610_p6 }
  0x6c   :  { %s1019_s2 = sld [smem:[#allocation2 + $0x49]]  ;;  %v346_v42 = vstv %s985_s29 }
  0x6d   :  { %v552_v14 = vpop.eup %551  ;;  %v312_v8 = vstv %s987_s30  ;;  %s1023_s7 = sld [smem:[#allocation2 + $0x4d]]  ;;  %p613_p9 = pnand %p612_p8, %p606_p5 }
  0x6e   :  { %v554_v25 = vpop.eup %553  ;;  %v311_v16 = vmul.f32 %v552_v14, %v310_v48  ;;  %v331_v13 = vmul.f32 %v552_v14, %v330_v52  ;;  %v332_v32 = vstv %s989_s3  ;;  %v351_v27 = vmul.f32 %v552_v14, %v350_v6  ;;  %s1028_s8 = sld [smem:[#allocation2 + $0x52]] }
  0x6f   :  { %v556_v21 = vpop.eup %555  ;;  %v315_v49 = vmul.f32 %v554_v25, %v314_v56  ;;  %v335_v38 = vmul.f32 %v554_v25, %v334_v60  ;;  %v352_v29 = vstv %s991_s4  ;;  %v355_v19 = vmul.f32 %v554_v25, %v354_v7  ;;  %s1031_s9 = sld [smem:[#allocation2 + $0x53]] }
  0x70   :  { %v558_v50 = vpop.eup %557  ;;  %v313_v22 = vadd.f32 %v312_v8, %v311_v16  ;;  %v318_v33 = vmul.f32 %v556_v21, %v317_v62  ;;  %v333_v40 = vadd.f32 %v332_v32, %v331_v13  ;;  %v338_v57 = vmul.f32 %v556_v21, %v337_v63  ;;  %s535_s10 = sld [smem:[#allocation2 + $0x54]] }
  0x71   :  { %v560_v28 = vpop.eup %559  ;;  %v353_v58 = vadd.f32 %v352_v29, %v351_v27  ;;  %v358_v30 = vmul.f32 %v556_v21, %v357_v23  ;;  %v321_v47 = vmul.f32 %v558_v50, %v320_v12  ;;  %v341_v0 = vmul.f32 %v558_v50, %v340_v3  ;;  %s536_s11 = sld [smem:[#allocation2 + $0x55]] }
  0x72   :  { %v316_v53 = vadd.f32 %v315_v49, %v313_v22  ;;  %v336_v15 = vadd.f32 %v335_v38, %v333_v40  ;;  %v562_v37 = vpop.eup %561  ;;  %v324_v55 = vmul.f32 %v560_v28, %v323_v9  ;;  %v361_v39 = vmul.f32 %v558_v50, %v360_v24  ;;  %s537_s12 = sld [smem:[#allocation2 + $0x56]] }
  0x73   :  { %v356_v17 = vadd.f32 %v355_v19, %v353_v58  ;;  %v366_v2 = vstv %s1001_s5  ;;  %v344_v34 = vmul.f32 %v560_v28, %v343_v31  ;;  %v364_v18 = vmul.f32 %v560_v28, %v363_v10  ;;  %s538_s13 = sld [smem:[#allocation2 + $0x57]] }
  0x74   :  { %v319_v59 = vadd.f32 %v318_v33, %v316_v53  ;;  %v339_v43 = vadd.f32 %v338_v57, %v336_v15  ;;  %v371_v44 = vmul.f32 %v552_v14, %v370_v54  ;;  %v372_v35 = vstv %s1011_s6  ;;  %s541_s14 = sld [smem:[#allocation2 + $0x5a]] }
  0x75   :  { %v359_v4 = vadd.f32 %v358_v30, %v356_v17  ;;  %v375_v45 = vmul.f32 %v554_v25, %v374_v61  ;;  %v327_v20 = vmul.f32 %v562_v37, %v326_v51  ;;  %v347_v26 = vmul.f32 %v562_v37, %v346_v42  ;;  %s542_s15 = sld [smem:[#allocation2 + $0x5b]] }
  0x76   :  { %v322_v11 = vadd.f32 %v321_v47, %v319_v59  ;;  %v342_v41 = vadd.f32 %v341_v0, %v339_v43  ;;  %v367_v46 = vmul.f32 %v562_v37, %v366_v2  ;;  %v373_v48 = vadd.f32 %v372_v35, %v371_v44  ;;  %s539_s16 = sld [smem:[#allocation2 + $0x58]] }
  0x77   :  { %v362_v36 = vadd.f32 %v361_v39, %v359_v4  ;;  %v378_v52 = vmul.f32 %v556_v21, %v377_v1  ;;  %v383_v60 = vstv %s1019_s2  ;;  %v381_v63 = vmul.f32 %v558_v50, %v380_v5  ;;  %s540_s17 = sld [smem:[#allocation2 + $0x59]] }
  0x78   :  { %v325_v6 = vadd.f32 %v324_v55, %v322_v11  ;;  %v345_v56 = vadd.f32 %v344_v34, %v342_v41  ;;  %v376_v62 = vadd.f32 %v375_v45, %v373_v48  ;;  %v386_v61 = vstv %s1023_s7  ;;  %s543_s18 = sld [smem:[#allocation2 + $0x5c]] }
  0x79   :  { %v365_v7 = vadd.f32 %v364_v18, %v362_v36  ;;  %v384_v24 = vmul.f32 %v560_v28, %v383_v60  ;;  %v387_v14 = vmul.f32 %v562_v37, %v386_v61  ;;  %v390_v9 = vstv %s1028_s8  ;;  %s544_s0 = sld [smem:[#allocation2 + $0x5d]] }
  0x7a   :  { %v328_v54 = vadd.f32 %v327_v20, %v325_v6  ;;  %v348_v23 = vadd.f32 %v347_v26, %v345_v56  ;;  %v379_v3 = vadd.f32 %v378_v52, %v376_v62  ;;  %v404_v31 = vstv %s1031_s9  ;;  %s545_s19 = sld [smem:[#allocation2 + $0x5e]] }
  0x7b   :  { %v368_v12 = vadd.f32 %v367_v46, %v365_v7  ;;  %v394_v10 = vstv %s535_s10  ;;  %v408_v25 = vstv %s536_s11  ;;  %v392_v13 = vstv %s541_s14 }
  0x7c   :  { %563 = vtanh.f32 %v328_v54  ;;  %v382_v1 = vadd.f32 %v381_v63, %v379_v3  ;;  %v397_v32 = vstv %s537_s12  ;;  %v406_v27 = vstv %s542_s15 }
  0x7d   :  { %565 = vtanh.f32 %v348_v23  ;;  %v411_v21 = vstv %s538_s13  ;;  %v400_v42 = vstv %s539_s16  ;;  %v414_v30 = vstv %s540_s17 }
  0x7e   :  { %567 = vtanh.f32 %v368_v12  ;;  %v385_v5 = vadd.f32 %v384_v24, %v382_v1  ;;  %v418_v39 = vstv %s543_s18 }
  0x7f   :  { %v422_v2 = vstv %s544_s0 }
  0x80   :  { %v388_v8 = vadd.f32 %v387_v14, %v385_v5  ;;  %v420_v43 = vstv %s545_s19 }
  0x82   :  { %569 = vtanh.f32 %v388_v8 }
  0x89   :  { %v564_v16 = vpop.eup %563 }
  0x8a   :  { %v566_v49 = vpop.eup %565  ;;  %v391_v38 = vmul.f32 %v564_v16, %v390_v9  ;;  %v405_v29 = vmul.f32 %v564_v16, %v404_v31 }
  0x8b   :  { %v568_v19 = vpop.eup %567  ;;  %v395_v50 = vmul.f32 %v566_v49, %v394_v10  ;;  %v409_v22 = vmul.f32 %v566_v49, %v408_v25 }
  0x8c   :  { %v393_v33 = vadd.f32 %v392_v13, %v391_v38  ;;  %v398_v40 = vmul.f32 %v568_v19, %v397_v32  ;;  %v407_v57 = vadd.f32 %v406_v27, %v405_v29  ;;  %v412_v28 = vmul.f32 %v568_v19, %v411_v21 }
  0x8e   :  { %v396_v51 = vadd.f32 %v395_v50, %v393_v33  ;;  %v410_v58 = vadd.f32 %v409_v22, %v407_v57 }
  0x8f   :  { %v570_v53 = vpop.eup %569 }
  0x90   :  { %v399_v47 = vadd.f32 %v398_v40, %v396_v51  ;;  %v413_v15 = vadd.f32 %v412_v28, %v410_v58  ;;  %v401_v0 = vmul.f32 %v570_v53, %v400_v42  ;;  %v415_v37 = vmul.f32 %v570_v53, %v414_v30 }
  0x92   :  { %v402_v55 = vadd.f32 %v401_v0, %v399_v47  ;;  %v416_v17 = vadd.f32 %v415_v37, %v413_v15 }
  0x94   :  { %571 = vtanh.f32 %v402_v55 }
  0x95   :  { %573 = vtanh.f32 %v416_v17 }
  0xa1   :  { %v572_v59 = vpop.eup %571 }
  0xa2   :  { %v574_v34 = vpop.eup %573  ;;  %v419_v18 = vmul.f32 %v572_v59, %v418_v39 }
  0xa3   :  { %v423_v4 = vmul.f32 %v574_v34, %v422_v2 }
  0xa4   :  { %v421_v44 = vadd.f32 %v420_v43, %v419_v18 }
  0xa6   :  { %v424_v35 = vadd.f32 %v423_v4, %v421_v44 }
  0xa8   :  { %575 = vtanh.f32 %v424_v35 }
  0xb5   :  { %v576_v45 = vpop.eup %575 }
  0xb6   :  { %v426_v11 = vmul.f32 0.5, %v576_v45 }
  0xb8   :  { %v427_v20 = vadd.f32 0.5, %v426_v11 }
  0xba   :  { %428 = vst [vmem:[#allocation7] sm:$0xff] %v427_v20 }
  0xbb   :  { %616 = shalt.err (!%p613_p9)
}
  0xbc   :  { %s1048_s1 = sld [smem:[#allocation14_spill]] }
  0xc2   :  { %438 = dma.vmem_to_hbm [thread:$0]  %s436_s21, 128, %s1048_s1, [#allocation4]  }
  0xc3   :  { %629 = dma.done.wait [#allocation4], 128  }
  0xc4   :  { %630 = vsyncadd [#allocation4], 4294967168 }
  0xc5   :  { %442 = vsyncpa [#allocation3], 1 }
  0xc6   :  { %443 = vsyncpa [#allocation4], 1 }
  0xc7   :  { %444 = vsyncpa [#allocation5], 1 }

</bundles_post_ra>
